<compile_context>
chip_gen: v6e
topology: v6e:2x2x1
jax: 0.10.0
libtpu: 0.0.40
codegen_flags: <defaults>
</compile_context>

<pallas_src>
import jax
import jax.numpy as jnp
from jax.experimental import pallas as pl
from jax.experimental.pallas import tpu as pltpu

# ---------------- config (small, consistent with the module) ----------------
BATCH = 16            # batch_tile = 8 -> grid (2,): v7x megacore sharding, M = 128
SEQ_LEN = 16          # L  (the "-1" dim of the view)
DATA_SIZE = 32        # D  (data_size / conv kernel width)
FILTERS = 8           # config['model']['filters']
MIN_GRAM = 2
MAX_GRAM = 4
HIDDEN = 32           # config['model']['hidden_size']

GRAMS = list(range(MIN_GRAM, MAX_GRAM + 1))
N_GRAMS = len(GRAMS)
A_MAX = MAX_GRAM
FEATURE_LEN = N_GRAMS * FILTERS               # 24


def _round_up(x, m):
    return (x + m - 1) // m * m


T_PAD = _round_up(SEQ_LEN - MIN_GRAM + 1, 8)        # 16 window positions (sublane-aligned)
L_PAD = max(SEQ_LEN, T_PAD + A_MAX - 1)             # source rows needed by the slab
KDIM = A_MAX * DATA_SIZE                            # 128 fused conv contraction dim
N_PAD = _round_up(FEATURE_LEN, 128)                 # 128 lane-dense conv-out / fc-K dim
HIDDEN_PAD = _round_up(HIDDEN, 128)                 # 128 lane-dense output
NEG = -1e30                                         # additive mask value (relu -> 0)


def textcnn_kernel(slab_ref, w_ref, bm_ref, fcw_ref, fcb_ref, out_ref):
    # slab_ref: (Bt, T_PAD, KDIM) bf16 — pre-built im2col windows (lane-dense).
    bt = slab_ref.shape[0]
    slab = slab_ref[...].reshape(bt * T_PAD, KDIM)

    # fused conv matmul: (Bt*T_PAD, 128) x (128, 128) bf16 -> f32 accumulate on MXU.
    z = jnp.dot(slab, w_ref[...], preferred_element_type=jnp.float32)
    z = z.reshape(bt, T_PAD, N_PAD)

    # bias + time-mask + lane-pad-mask folded into one additive term, then ReLU.
    z = jnp.maximum(z + bm_ref[...], 0.0)

    # max over time (masked / pad positions are exactly 0 post-ReLU).
    feat = jnp.max(z, axis=1)                                    # (Bt, N_PAD) f32

    # fc epilogue: bf16 inputs, f32 accumulation, K = N_PAD = 128, N = 128.
    y = jnp.dot(feat.astype(jnp.bfloat16), fcw_ref[...],
                preferred_element_type=jnp.float32) + fcb_ref[...]
    out_ref[...] = y.astype(out_ref.dtype)


def textcnn_forward(x, conv_params, fc_w, fc_b, *, batch_tile=None):
    """x: (B, L, D) f32. conv_params: list of (w_(a,D,F), b_(1,F)). Returns (B, HIDDEN)."""
    B, L, D = x.shape
    assert L == SEQ_LEN and D == DATA_SIZE
    assert max(GRAMS) <= SEQ_LEN  # every gram needs >= 1 valid window (mask-to-0 is safe)

    if batch_tile is None:
        # largest multiple-of-8 divisor of B giving >= 2 grid steps (v7x megacore),
        # capped for VMEM headroom on v7x; fall back to B for tiny batches.
        batch_tile = B
        cap = min(B // 2, 512)
        for t in range(cap, 7, -1):
            if t % 8 == 0 and B % t == 0:
                batch_tile = t
                break
    assert B % batch_tile == 0

    # ---- wrapper-side im2col (bf16): zero-pad time, A_MAX shifted copies on lanes ----
    xq = x.astype(jnp.bfloat16)
    x_pad = jnp.zeros((B, L_PAD, D), jnp.bfloat16).at[:, :L, :].set(xq)
    slab = jnp.concatenate([x_pad[:, i:i + T_PAD, :] for i in range(A_MAX)],
                           axis=-1)                              # (B, T_PAD, KDIM) bf16

    # fused conv weight (KDIM, N_PAD) bf16: per-gram blocks zero-padded in K and N.
    w_fused = jnp.zeros((KDIM, N_PAD), jnp.float32)
    # additive bias+mask (T_PAD, N_PAD) f32: bias on valid (t, gram) cells, NEG elsewhere.
    bias_mask = jnp.full((T_PAD, N_PAD), NEG, jnp.float32)
    for g, ((w, b), a) in enumerate(zip(conv_params, GRAMS)):
        c0, c1 = g * FILTERS, (g + 1) * FILTERS
        w_fused = w_fused.at[: a * D, c0:c1].set(w.reshape(a * D, FILTERS))
        t_valid = SEQ_LEN - a + 1
        bias_mask = bias_mask.at[:t_valid, c0:c1].set(
            jnp.broadcast_to(b, (t_valid, FILTERS)))
    w_fused = w_fused.astype(jnp.bfloat16)

    # lane-dense fc params: K padded to N_PAD, N padded to HIDDEN_PAD, bf16 weight.
    fcw_pad = (jnp.zeros((N_PAD, HIDDEN_PAD), jnp.float32)
               .at[:FEATURE_LEN, :HIDDEN].set(fc_w)).astype(jnp.bfloat16)
    fcb_pad = jnp.zeros((1, HIDDEN_PAD), jnp.float32).at[:, :HIDDEN].set(fc_b)

    grid = (B // batch_tile,)
    out = pl.pallas_call(
        textcnn_kernel,
        out_shape=jax.ShapeDtypeStruct((B, HIDDEN_PAD), jnp.float32),
        grid=grid,
        in_specs=[
            pl.BlockSpec((batch_tile, T_PAD, KDIM), lambda i: (i, 0, 0)),
            pl.BlockSpec((KDIM, N_PAD), lambda i: (0, 0)),
            pl.BlockSpec((T_PAD, N_PAD), lambda i: (0, 0)),
            pl.BlockSpec((N_PAD, HIDDEN_PAD), lambda i: (0, 0)),
            pl.BlockSpec((1, HIDDEN_PAD), lambda i: (0, 0)),
        ],
        out_specs=pl.BlockSpec((batch_tile, HIDDEN_PAD), lambda i: (i, 0)),
        compiler_params=pltpu.CompilerParams(
            dimension_semantics=("parallel",),        # batch shards over v7x's 2 TCs
            vmem_limit_bytes=32 * 1024 * 1024,        # safe on v5e/v6e/v7x
        ),
    )(slab, w_fused, bias_mask, fcw_pad, fcb_pad)
    return out[:, :HIDDEN]


def ref_forward(x, conv_params, fc_w, fc_b):
    """Pure-JAX reference matching the PyTorch module semantics, with the same bf16
    rounding of x / conv weights / pooled features / fc weight as the kernel
    (f32 accumulation)."""
    B, L, D = x.shape
    xq = x.astype(jnp.bfloat16).astype(jnp.float32)
    feats = []
    for (w, b), a in zip(conv_params, GRAMS):
        wq = w.astype(jnp.bfloat16).astype(jnp.float32)
        T = L - a + 1
        acc = jnp.zeros((B, T, FILTERS), jnp.float32)
        for i in range(a):
            acc = acc + jnp.einsum('btd,df->btf', xq[:, i:i + T, :], wq[i],
                                   precision=jax.lax.Precision.HIGHEST)
        acc = jnp.maximum(acc + b, 0.0)
        feats.append(jnp.max(acc, axis=1))
    feat = jnp.concatenate(feats, axis=1)
    featq = feat.astype(jnp.bfloat16).astype(jnp.float32)
    fcwq = fc_w.astype(jnp.bfloat16).astype(jnp.float32)
    return jnp.dot(featq, fcwq, precision=jax.lax.Precision.HIGHEST) + fc_b


if __name__ == "__main__":
    key = jax.random.PRNGKey(0)

    # deterministic synthetic parameters (shapes follow the module's __init__)
    conv_params = []
    for a in GRAMS:
        key, kw, kb = jax.random.split(key, 3)
        # PyTorch conv weight: (FILTERS, 1, a, DATA_SIZE) -> stored as (a, D, F)
        w_pt = jax.random.normal(kw, (FILTERS, 1, a, DATA_SIZE), jnp.float32) * 0.1
        w = jnp.transpose(w_pt[:, 0, :, :], (1, 2, 0))           # (a, D, F)
        b = jax.random.normal(kb, (1, FILTERS), jnp.float32) * 0.1
        conv_params.append((w, b))

    key, kfw, kfb, kx = jax.random.split(key, 4)
    # PyTorch fc weight: (HIDDEN, FEATURE_LEN) -> stored transposed
    fc_w_pt = jax.random.normal(kfw, (HIDDEN, FEATURE_LEN), jnp.float32) * 0.1
    fc_w = fc_w_pt.T                                             # (FEATURE_LEN, HIDDEN)
    fc_b = jax.random.normal(kfb, (1, HIDDEN), jnp.float32) * 0.1

    x = jax.random.normal(kx, (BATCH, SEQ_LEN, DATA_SIZE), jnp.float32)

    y = jax.block_until_ready(textcnn_forward(x, conv_params, fc_w, fc_b))
    y_ref = ref_forward(x, conv_params, fc_w, fc_b)

    assert y.shape == (BATCH, HIDDEN)
    assert jnp.allclose(y, y_ref, atol=1e-3, rtol=1e-3), "mismatch vs reference"

    print("KERNEL_OK")
</pallas_src>

<mosaic_0001>
module attributes {stable_mosaic.version = 11 : i64} {
  func.func @textcnn_kernel(%arg0: i32, %arg1: memref<8x16x128xbf16, #tpu.memory_space<vmem>>, %arg2: memref<128x128xbf16, #tpu.memory_space<vmem>>, %arg3: memref<16x128xf32, #tpu.memory_space<vmem>>, %arg4: memref<128x128xbf16, #tpu.memory_space<vmem>>, %arg5: memref<1x128xf32, #tpu.memory_space<vmem>>, %arg6: memref<8x128xf32, #tpu.memory_space<vmem>>) attributes {dimension_semantics = [#tpu.dimension_semantics<parallel>], iteration_bounds = array<i64: 2>, scalar_prefetch = 0 : i64, scratch_operands = 0 : i64, tpu.core_type = #tpu.core_type<tc>, window_params = [{transform_indices = @transform_0, window_bounds = array<i64: 8, 16, 128>}, {pipeline_mode = #tpu.pipeline_mode<synchronous>, transform_indices = @transform_1, window_bounds = array<i64: 128, 128>}, {pipeline_mode = #tpu.pipeline_mode<synchronous>, transform_indices = @transform_2, window_bounds = array<i64: 16, 128>}, {pipeline_mode = #tpu.pipeline_mode<synchronous>, transform_indices = @transform_3, window_bounds = array<i64: 128, 128>}, {pipeline_mode = #tpu.pipeline_mode<synchronous>, transform_indices = @transform_4, window_bounds = array<i64: 1, 128>}, {transform_indices = @transform_5, window_bounds = array<i64: 8, 128>}]} {
    %c0 = arith.constant 0 : index
    %c0_0 = arith.constant 0 : index
    %c0_1 = arith.constant 0 : index
    %0 = vector.load %arg1[%c0, %c0_0, %c0_1] : memref<8x16x128xbf16, #tpu.memory_space<vmem>>, vector<8x16x128xbf16>
    %1 = vector.shape_cast %0 : vector<8x16x128xbf16> to vector<128x128xbf16>
    %c0_2 = arith.constant 0 : index
    %c0_3 = arith.constant 0 : index
    %2 = vector.load %arg2[%c0_2, %c0_3] : memref<128x128xbf16, #tpu.memory_space<vmem>>, vector<128x128xbf16>
    %cst = arith.constant dense<0.000000e+00> : vector<128x128xf32>
    %3 = tpu.matmul %1, %2, %cst {dimension_numbers = #tpu.dot_dimension_numbers<[1], [0], [0], [1], [0, 0, 1, 1], [], []>} : vector<128x128xbf16>, vector<128x128xbf16>, vector<128x128xf32> -> vector<128x128xf32>
    %4 = vector.shape_cast %3 : vector<128x128xf32> to vector<8x16x128xf32>
    %c0_4 = arith.constant 0 : index
    %c0_5 = arith.constant 0 : index
    %5 = vector.load %arg3[%c0_4, %c0_5] : memref<16x128xf32, #tpu.memory_space<vmem>>, vector<16x128xf32>
    %6 = vector.shape_cast %5 : vector<16x128xf32> to vector<1x16x128xf32>
    %7 = vector.broadcast %6 : vector<1x16x128xf32> to vector<8x16x128xf32>
    %8 = arith.addf %4, %7 : vector<8x16x128xf32>
    %cst_6 = arith.constant 0.000000e+00 : f32
    %9 = vector.broadcast %cst_6 : f32 to vector<8x16x128xf32>
    %10 = arith.maximumf %8, %9 : vector<8x16x128xf32>
    %cst_7 = arith.constant dense<0xFF800000> : vector<8x128xf32>
    %11 = vector.multi_reduction <maximumf>, %10, %cst_7 [1] : vector<8x16x128xf32> to vector<8x128xf32>
    %12 = arith.truncf %11 : vector<8x128xf32> to vector<8x128xbf16>
    %c0_8 = arith.constant 0 : index
    %c0_9 = arith.constant 0 : index
    %13 = vector.load %arg4[%c0_8, %c0_9] : memref<128x128xbf16, #tpu.memory_space<vmem>>, vector<128x128xbf16>
    %cst_10 = arith.constant dense<0.000000e+00> : vector<8x128xf32>
    %14 = tpu.matmul %12, %13, %cst_10 {dimension_numbers = #tpu.dot_dimension_numbers<[1], [0], [0], [1], [0, 0, 1, 1], [], []>} : vector<8x128xbf16>, vector<128x128xbf16>, vector<8x128xf32> -> vector<8x128xf32>
    %c0_11 = arith.constant 0 : index
    %c0_12 = arith.constant 0 : index
    %15 = vector.load %arg5[%c0_11, %c0_12] : memref<1x128xf32, #tpu.memory_space<vmem>>, vector<1x128xf32>
    %16 = vector.broadcast %15 : vector<1x128xf32> to vector<8x128xf32>
    %17 = arith.addf %14, %16 : vector<8x128xf32>
    %c0_13 = arith.constant 0 : index
    %c0_14 = arith.constant 0 : index
    %18 = vector.load %arg6[%c0_13, %c0_14] : memref<8x128xf32, #tpu.memory_space<vmem>>, vector<8x128xf32>
    tpu.vector_store %arg6[%c0_13, %c0_14], %17 {strides = array<i32>} : memref<8x128xf32, #tpu.memory_space<vmem>>, vector<8x128xf32>,
    return
  }
  func.func @transform_0(%arg0: i32) -> (i32, i32, i32) {
    %c0_i32 = arith.constant 0 : i32
    %c0_i32_0 = arith.constant 0 : i32
    %c0_i32_1 = arith.constant 0 : i32
    return %arg0, %c0_i32, %c0_i32_0 : i32, i32, i32
  }
  func.func @transform_1(%arg0: i32) -> (i32, i32) {
    %c0_i32 = arith.constant 0 : i32
    %c0_i32_0 = arith.constant 0 : i32
    %c0_i32_1 = arith.constant 0 : i32
    return %c0_i32, %c0_i32_0 : i32, i32
  }
  func.func @transform_2(%arg0: i32) -> (i32, i32) {
    %c0_i32 = arith.constant 0 : i32
    %c0_i32_0 = arith.constant 0 : i32
    %c0_i32_1 = arith.constant 0 : i32
    return %c0_i32, %c0_i32_0 : i32, i32
  }
  func.func @transform_3(%arg0: i32) -> (i32, i32) {
    %c0_i32 = arith.constant 0 : i32
    %c0_i32_0 = arith.constant 0 : i32
    %c0_i32_1 = arith.constant 0 : i32
    return %c0_i32, %c0_i32_0 : i32, i32
  }
  func.func @transform_4(%arg0: i32) -> (i32, i32) {
    %c0_i32 = arith.constant 0 : i32
    %c0_i32_0 = arith.constant 0 : i32
    %c0_i32_1 = arith.constant 0 : i32
    return %c0_i32, %c0_i32_0 : i32, i32
  }
  func.func @transform_5(%arg0: i32) -> (i32, i32) {
    %c0_i32 = arith.constant 0 : i32
    %c0_i32_0 = arith.constant 0 : i32
    return %arg0, %c0_i32 : i32, i32
  }
}

</mosaic_0001>

<bundles_post_ra>
// kernel: tpu_custom_call.1
= control target key start
LH: loop header
LB: loop body
LE: loop exit
PB: predicated region body
PF: predicated region fallthrough
CT: control target
= control target key end

     0   :  { %10 = vsyncpa [#allocation3], 0  ;;  %s1563_s0 = inlined_call_operand.hbm [shape: bf16[16,16,128], index: 0, kind: input, shape index: {}]   ;;  %s1564_s1 = inlined_call_operand.hbm [shape: bf16[128,128], index: 1, kind: input, shape index: {}]   ;;  %s1565_s2 = inlined_call_operand.hbm [shape: f32[16,128], index: 2, kind: input, shape index: {}]   ;;  %s1566_s3 = inlined_call_operand.hbm [shape: bf16[128,128], index: 3, kind: input, shape index: {}]   ;;  %s1567_s4 = inlined_call_operand.vmem [shape: f32[1,128], index: 4, kind: input, shape index: {}]   ;;  %s1568_s5 = inlined_call_operand.hbm [shape: f32[16,128], index: 5, kind: output, shape index: {}]  }
   0x1   :  { %12 = vsyncpa [#allocation3 + $0x1], 0 }
   0x2   :  { %13 = vsyncpa [#allocation6], 0 }
   0x3   :  { %14 = vsyncpa [#allocation9], 0 }
   0x4   :  { %15 = vsyncpa [#allocation4], 0 }
   0x5   :  { %17 = vsyncpa [#allocation4 + $0x1], 0  ;;  %s1322_s18 = smov 0   ;;  %s1324_s19 = smov 0  }
   0x6   :  { %s1326_s20 = smov 0   ;;  %s1328_s21 = smov 0  }
   0x7 LB: > { %s1343_s22 = sadd.s32 4294967295, %s1279_s21   ;;  %s870_s23 = sadd.s32 4294967294, %s1279_s21   ;;  %s1279_s21 = sphi %s1328_s21, %s1593_s21   ;;  %s1275_s20 = sphi %s1326_s20, %s1592_s20   ;;  %s1271_s19 = sphi %s1324_s19, %s1591_s19   ;;  %s1267_s18 = sphi %s1322_s18, %s1590_s18  }
   0x8   : > { %p43_p0 = scmp.ne.s32.totalorder %s1271_s19, %s1267_s18  ;;  %p1569_p1 = scmp.eq.s32.totalorder %s1343_s22, 0 }
   0x9   : > { %p151_p2 = scmp.eq.s32.totalorder %s1343_s22, 1  ;;  %p157_p3 = scmp.eq.s32.totalorder %s870_s23, 1 }
   0xa   : > { %p1352_p4 = por %p1569_p1, %p43_p0  ;;  %p871_p5 = scmp.ge.s32.totalorder %s1279_s21, 1 }
   0xb   : > { %p1357_p6 = por %p157_p3, %p43_p0  ;;  %p164_p7 = scmp.lt.s32.totalorder %s1279_s21, 3 }
   0xc   : > { %s1574_s24 = scalar_select %p1352_p4, 1, 0 }
   0xd   : > { %s1575_s25 = scalar_select %p1357_p6, 1, 0 }
   0xe   : > { %p1362_p8 = pnand %p871_p5, %p164_p7  ;;  %s1281_s27 = smov [#allocation5]  }
   0xf   : > { %s176_s28 = sshll.u32 %s1281_s27, 4  ;;  %s1282_s30 = smov [#allocation7]   ;;  %s177_s28 = int_to_ptr.vmem [resolvable:$true] %s176_s28 }
  0x10   : > { %s1576_s26 = scalar_select %p1362_p8, 1, 0 }
  0x11   : > { %p1010_p9 = pneg %p1362_p8  ;;  %s189_s6 = sshll.u32 %s1282_s30, 4  ;;  %s190_s6 = int_to_ptr.vmem [resolvable:$true] %s189_s6 }
  0x12   : > { %s1112_s7 = scalar_lea.vmem %s177_s28, 1024  ;;  %p1120_p5 = scmp.lt.s32.totalorder %s177_s28, %s177_s28 }
  0x13   : > { %p1371_p11 = pnand %p1010_p9, %p1569_p1  ;;  %p1113_p13 = scmp.ne.s32.totalorder %s177_s28, %s1112_s7 }
  0x14   : > { %p1121_p7 = scmp.lt.s32.totalorder %s1112_s7, %s1112_s7 }
  0x15   : > { %p1103_p12 = pneg %p1371_p11 }
  0x16   : > { %p1122_p10 = por %p1121_p7, %p1120_p5 }
  0x17   : > { %p1115_p0 = pnand %p1113_p13, %p1103_p12 }
  0x19   : > { %p1116_p3 = pneg %p1115_p0 }
  0x1b   : > { %p1123_p9 = pnand %p1122_p10, %p1116_p3 }
  0x1d   : > { %1126 = shalt.err (!%p1123_p9)
}
  0x1e   : > { %s1570_s8 = smov 64   ;;  %s1284_s9 = smov 4  }
  0x1f   : > { %1013 = dma.hbm_to_vmem [thread:$0]  (!%p1371_p11), %s1564_s1, 1024, %s177_s28, [#allocation6], %s1570_s8, %s1570_s8, %s1284_s9  }
  0x20   : > { %s1138_s12 = scalar_lea.vmem %s190_s6, 256  ;;  %p1146_p10 = scmp.lt.s32.totalorder %s190_s6, %s190_s6 }
  0x21   : > { %p1139_p13 = scmp.ne.s32.totalorder %s190_s6, %s1138_s12  ;;  %p1147_p3 = scmp.lt.s32.totalorder %s1138_s12, %s1138_s12 }
  0x23   : > { %p1141_p0 = pnand %p1139_p13, %p1103_p12  ;;  %p1148_p7 = por %p1147_p3, %p1146_p10 }
  0x25   : > { %p1142_p5 = pneg %p1141_p0 }
  0x27   : > { %p1149_p9 = pnand %p1148_p7, %p1142_p5 }
  0x29   : > { %1152 = shalt.err (!%p1149_p9)
}
  0x2a   : > { %s1285_s13 = smov 128   ;;  %s1286_s14 = smov 8  }
  0x2b   : > { %1016 = dma.hbm_to_vmem [thread:$0]  (!%p1371_p11), %s1565_s2, 256, %s190_s6, [#allocation6], %s1285_s13, %s1285_s13, %s1286_s14  }
  0x2c   : > { %s1287_s17 = smov [#allocation8]   ;;  %s1397_s27 = sadd.s32 1, %s1279_s21  }
  0x2d   : > { %s202_s23 = sshll.u32 %s1287_s17, 4  ;;  %s203_s23 = int_to_ptr.vmem [resolvable:$true] %s202_s23 }
  0x2e   : > { %s1164_s28 = scalar_lea.vmem %s203_s23, 1024  ;;  %p1172_p10 = scmp.lt.s32.totalorder %s203_s23, %s203_s23 }
  0x2f   : > { %p1165_p13 = scmp.ne.s32.totalorder %s203_s23, %s1164_s28  ;;  %p1173_p3 = scmp.lt.s32.totalorder %s1164_s28, %s1164_s28 }
  0x31   : > { %p1167_p0 = pnand %p1165_p13, %p1103_p12  ;;  %p1174_p7 = por %p1173_p3, %p1172_p10 }
  0x33   : > { %p1168_p5 = pneg %p1167_p0 }
  0x35   : > { %p1175_p9 = pnand %p1174_p7, %p1168_p5 }
  0x37   : > { %1178 = shalt.err (!%p1175_p9)
}
  0x38   : > { %1019 = dma.hbm_to_vmem [thread:$0]  (!%p1371_p11), %s1566_s3, 1024, %s203_s23, [#allocation9], %s1570_s8, %s1570_s8, %s1284_s9  }
  0x39   : > { %s27_s7 = ssub.s32 %s1279_s21, %s1397_s27  ;;  %s30_s29 = sadd.s32 1, %s1275_s20 }
  0x3a   : > { %p28_p12 = scmp.eq.s32.totalorder %s27_s7, 0  ;;  %p37_p13 = scmp.ne.s32.totalorder %s1275_s20, %s1271_s19 }
  0x3b   : > { %p38_p0 = scmp.eq.s32.totalorder %s1279_s21, 0  ;;  %p1031_p5 = scmp.lt.s32.totalorder %s1279_s21, 2 }
  0x3c   : > { %s1418_s10 = scalar_select %p28_p12, %s1275_s20, %s30_s29  }
  0x3d   : > { %p39_p10 = por %p38_p0, %p37_p13  ;;  %p1422_p3 = por %p151_p2, %p37_p13 }
  0x3e   : > { %s219_s12 = sand.u32 1, %s1275_s20   ;;  %s916_s13 = sshll.u32 %s1279_s21, 10 }
  0x3f   : > { %s1578_s11 = scalar_select %p1422_p3, 1, 0 }
  0x40   : > { %s876_s14 = sshll.u32 %s219_s12, 6  ;;  %s1431_s17 = scalar_lea.hbm %s1563_s0, %s916_s13 }
  0x41   : > { %s223_s23 = scalar_lea.vmem [#allocation2], %s876_s14  ;;  %p1433_p11 = pnand %p1031_p5, %p39_p10 }
  0x42   : > { %s231_s28 = sshll.u32 %s223_s23, 4  ;;  %s1439_s6 = scalar_lea.sflag [#allocation3], %s219_s12  ;;  %s1437_s28 = int_to_ptr.vmem [resolvable:$true] %s231_s28 }
  0x43   : > { %s1179_s7 = scalar_lea.hbm %s1431_s17, 1024  ;;  %p1181_p7 = pneg %p1433_p11 }
  0x44   : > { %p1180_p2 = scmp.ne.s32.totalorder %s1431_s17, %s1179_s7  ;;  %s1184_s14 = scalar_lea.hbm %s1563_s0, 2048 }
  0x45   : > { %p1185_p13 = scmp.lt.s32.totalorder %s1431_s17, %s1563_s0  ;;  %p1186_p0 = scmp.lt.s32.totalorder %s1184_s14, %s1179_s7 }
  0x46   : > { %p1182_p9 = pnand %p1181_p7, %p1180_p2 }
  0x47   : > { %p1187_p5 = por %p1186_p0, %p1185_p13 }
  0x48   : > { %p1183_p12 = pneg %p1182_p9 }
  0x4a   : > { %p1188_p10 = pnand %p1187_p5, %p1183_p12 }
  0x4c   : > { %1191 = shalt.err (!%p1188_p10)
}
  0x4d   : > { %s1192_s12 = scalar_lea.vmem %s1437_s28, 1024  ;;  %s1288_s23 = smov [#allocation2]  }
  0x4e   : > { %p1193_p1 = scmp.ne.s32.totalorder %s1437_s28, %s1192_s12  ;;  %s1197_s8 = sshll.u32 %s1288_s23, 4  ;;  %s1198_s8 = int_to_ptr.vmem [resolvable:$false] %s1197_s8 }
  0x4f   : > { %s1199_s29 = scalar_lea.vmem %s1198_s8, 2048  ;;  %p1200_p9 = scmp.lt.s32.totalorder %s1437_s28, %s1198_s8 }
  0x50   : > { %p1195_p6 = pnand %p1193_p1, %p1181_p7  ;;  %p1201_p3 = scmp.lt.s32.totalorder %s1199_s29, %s1192_s12 }
  0x52   : > { %p1196_p2 = pneg %p1195_p6  ;;  %p1202_p4 = por %p1201_p3, %p1200_p9 }
  0x54   : > { %p1203_p8 = pnand %p1202_p4, %p1196_p2 }
  0x56   : > { %1206 = shalt.err (!%p1203_p8)
}
  0x57   : > { %s1580_s7 = smov 64   ;;  %p1581_p1 = scmp.ne.s32.totalorder %s1576_s26, 0 }
  0x58   : > { %1023 = dma.hbm_to_vmem [thread:$0]  (!%p1433_p11), %s1431_s17, 1024, %s1437_s28, %s1439_s6, %s1580_s7, %s1580_s7, %s1284_s9  }
  0x59   : > { %243 = sbr.rel (%p1581_p1) target bundleno = 592 (0x250), region = 40  ;;  %s1466_s13 = sand.u32 (!%p1581_p1), 1, %s1271_s19  }
  0x5a   : > { %s881_s8 = sshll.u32 (!%p1581_p1), %s1466_s13, 6  ;;  %s246_s14 = scalar_lea.sflag (!%p1581_p1), [#allocation3], %s1466_s13 }
  0x5b   : > { %s1470_s15 = scalar_lea.vmem (!%p1581_p1), [#allocation2], %s881_s8  ;;  %p1582_p4 = scmp.ne.s32.totalorder (!%p1581_p1), %s1574_s24, 0 }
  0x5e   : > { %1250 = dma.done.wait (%p1582_p4), %s246_s14, 1024  }
  0x5f   : > { %1252 = vsyncadd (%p1582_p4), %s246_s14, 4294966272  ;;  %p1583_p6 = scmp.eq.s32.totalorder %s1343_s22, 0 }
  0x61   : > { %1254 = dma.done.wait (%p1583_p6), [#allocation6], 1280   ;;  %p1584_p8 = pmov %p1583_p6 }
  0x62   : > { %p1585_p3 = pmov %p1583_p6 }
  0x63   : > { %1256 = vsyncadd (%p1584_p8), [#allocation6], 4294966016 }
  0x64   : > { %1258 = dma.done.wait (%p1585_p3), [#allocation9], 1024   ;;  %p1586_p11 = pmov %p1585_p3 }
  0x65   : > { %v1077_v0 = vld [vmem:[#allocation5 + $0x38] sm:$0xff]   ;;  %v1078_v1 = vld [vmem:[#allocation5 + $0x30] sm:$0xff]   ;;  %v1079_v2 = vld [vmem:[#allocation5 + $0x28] sm:$0xff]   ;;  %v1289_v17 = vmov 0.0   ;;  %vm1290_vm0 = vmmov 0   ;;  %vm652_vm1 = vcmask 1041409  }
  0x66   : > { %1260 = vsyncadd (%p1586_p11), [#allocation9], 4294966272  ;;  %942 = vmatprep.subr.bf16.mxu0 %v1077_v0  ;;  %v1080_v3 = vld [vmem:[#allocation5 + $0x20] sm:$0xff]   ;;  %v1081_v5 = vld [vmem:[#allocation5 + $0x18] sm:$0xff]   ;;  %974 = vmatprep.subr.bf16.mxu1 %v1289_v17  ;;  %vm654_vm2 = vcmask 1042434   ;;  %vm656_vm3 = vcmask 1043459  }
  0x67   : > { %943 = vmatpush3.bf16.msra.mxu0 %v1077_v0  ;;  %v1085_v4 = vld [vmem:[%s1470_s15] sm:$0xff]   ;;  %v1082_v6 = vld [vmem:[#allocation5 + $0x10] sm:$0xff]   ;;  %v1083_v7 = vld [vmem:[#allocation5 + $0x8] sm:$0xff]   ;;  %990 = vmatprep.mubr.msk.bf16.mxu1 %vm1290_vm0, %v1289_v17  ;;  %vm658_vm4 = vcmask 1044484   ;;  %vm660_vm5 = vcmask 1045509   ;;  %vm662_vm6 = vcmask 1046534  }
  0x68   : > { %944 = vmatprep.subr.bf16.mxu0 %v1078_v1  ;;  %958 = vmatprep.mubr.bf16.mxu0 %v1085_v4  ;;  %v1084_v8 = vld [vmem:[#allocation5] sm:$0xff]   ;;  %v1086_v9 = vld [vmem:[%s1470_s15 + $0x8] sm:$0xff]   ;;  %v1087_v10 = vld [vmem:[%s1470_s15 + $0x10] sm:$0xff]   ;;  %vm664_vm7 = vcmask 1047559   ;;  %s885_s24 = sshll.u32 %s1466_s13, 3  ;;  %s912_s17 = sshll.u32 %s1343_s22, 7 }
  0x69   : > { %v1088_v11 = vld [vmem:[%s1470_s15 + $0x18] sm:$0xff]   ;;  %v1089_v12 = vld [vmem:[%s1470_s15 + $0x20] sm:$0xff]   ;;  %v1090_v13 = vld [vmem:[%s1470_s15 + $0x28] sm:$0xff]   ;;  %s287_s28 = scalar_lea.vmem [#allocation10], %s885_s24  ;;  %s1520_s12 = scalar_lea.hbm %s1568_s5, %s912_s17 }
  0x6a   : > { %v1091_v14 = vld [vmem:[%s1470_s15 + $0x30] sm:$0xff]   ;;  %v1092_v15 = vld [vmem:[%s1470_s15 + $0x38] sm:$0xff]   ;;  %v1093_v16 = vld [vmem:[#allocation8 + $0x38] sm:$0xff]   ;;  %s771_s30 = sshll.u32 %s287_s28, 4  ;;  %s758_s23 = scalar_lea.sflag [#allocation4], %s1466_s13  ;;  %s1522_s30 = int_to_ptr.vmem [resolvable:$true] %s771_s30 }
  0x6b   : > { %945 = vmatpush3.bf16.msra.mxu0 %v1078_v1  ;;  %975 = vmatpush3.bf16.msra.mxu1 %v1093_v16  ;;  %v1094_v18 = vld [vmem:[#allocation8 + $0x30] sm:$0xff]   ;;  %v1095_v19 = vld [vmem:[#allocation8 + $0x28] sm:$0xff]   ;;  %v1096_v20 = vld [vmem:[#allocation8 + $0x20] sm:$0xff]   ;;  %s1207_s29 = scalar_lea.vmem %s1522_s30, 128  ;;  %p1587_p12 = scmp.ne.s32.totalorder %s1578_s11, 0 }
  0x6c   : > { %946 = vmatprep.subr.bf16.mxu0 %v1079_v2  ;;  %976 = vmatprep.subr.bf16.mxu1 %v1289_v17  ;;  %v1097_v21 = vld [vmem:[#allocation8 + $0x18] sm:$0xff]   ;;  %v1098_v22 = vld [vmem:[#allocation8 + $0x10] sm:$0xff]   ;;  %v1099_v23 = vld [vmem:[#allocation8 + $0x8] sm:$0xff]   ;;  %p1208_p7 = scmp.ne.s32.totalorder %s1522_s30, %s1207_s29  ;;  %s1291_s22 = smov [#allocation10]  }
  0x6d   : > { %v1100_v24 = vld [vmem:[#allocation8] sm:$0xff]   ;;  %v1492_v26 = vld [vmem:[#allocation7] sm:$0xff]  ;;  %v1494_v28 = vld [vmem:[#allocation7 + $0x8] sm:$0xff]  ;;  %s1211_s7 = sshll.u32 %s1291_s22, 4  ;;  %s1212_s7 = int_to_ptr.vmem [resolvable:$false] %s1211_s7 }
  0x6e   : > { %p1209_p13 = pnand %p1208_p7, %p1587_p12  ;;  %s1213_s8 = scalar_lea.vmem %s1212_s7, 256 }
  0x6f   : > { %947 = vmatpush3.bf16.msra.mxu0 %v1079_v2  ;;  %977 = vmatpush3.bf16.msra.mxu1 %v1094_v18  ;;  %p1214_p5 = scmp.lt.s32.totalorder %s1522_s30, %s1212_s7  ;;  %p1215_p10 = scmp.lt.s32.totalorder %s1213_s8, %s1207_s29 }
  0x70   : > { %948 = vmatprep.subr.bf16.mxu0 %v1080_v3  ;;  %978 = vmatprep.subr.bf16.mxu1 %v1289_v17  ;;  %p1210_p0 = pneg %p1209_p13 }
  0x71   : > { %p1216_p2 = por %p1215_p10, %p1214_p5 }
  0x73   : > { %949 = vmatpush3.bf16.msra.mxu0 %v1080_v3  ;;  %979 = vmatpush3.bf16.msra.mxu1 %v1095_v19  ;;  %p1217_p9 = pnand %p1216_p2, %p1210_p0 }
  0x74   : > { %950 = vmatprep.subr.bf16.mxu0 %v1081_v5  ;;  %980 = vmatprep.subr.bf16.mxu1 %v1289_v17 }
  0x77   : > { %951 = vmatpush3.bf16.msra.mxu0 %v1081_v5  ;;  %981 = vmatpush3.bf16.msra.mxu1 %v1096_v20 }
  0x78   : > { %952 = vmatprep.subr.bf16.mxu0 %v1082_v6  ;;  %982 = vmatprep.subr.bf16.mxu1 %v1289_v17 }
  0x7b   : > { %953 = vmatpush3.bf16.msra.mxu0 %v1082_v6  ;;  %983 = vmatpush3.bf16.msra.mxu1 %v1097_v21 }
  0x7c   : > { %954 = vmatprep.subr.bf16.mxu0 %v1083_v7  ;;  %984 = vmatprep.subr.bf16.mxu1 %v1289_v17 }
  0x7f   : > { %955 = vmatpush3.bf16.msra.mxu0 %v1083_v7  ;;  %985 = vmatpush3.bf16.msra.mxu1 %v1098_v22 }
  0x80   : > { %956 = vmatprep.subr.bf16.mxu0 %v1084_v8  ;;  %986 = vmatprep.subr.bf16.mxu1 %v1289_v17 }
  0x83   : > { %957 = vmatpush3.bf16.msra.mxu0 %v1084_v8  ;;  %987 = vmatpush3.bf16.msra.mxu1 %v1099_v23 }
  0x84   : > { %988 = vmatprep.subr.bf16.mxu1 %v1289_v17 }
  0x86   : > { %959 = vmatmul.mubr.bf16.vlgmr.msra.gmra.mxu0 %v1086_v9 }
  0x87   : > { %962 = vmatprep.mubr.bf16.mxu0 %v1087_v10  ;;  %989 = vmatpush3.bf16.msra.mxu1 %v1100_v24 }
  0x8e   : > { %963 = vmatmul.mubr.bf16.gmra.mxu0 %v1088_v11 }
  0x8f   : > { %966 = vmatprep.mubr.bf16.mxu0 %v1089_v12 }
  0x96   : > { %967 = vmatmul.mubr.bf16.gmra.mxu0 %v1090_v13 }
  0x97   : > { %970 = vmatprep.mubr.bf16.mxu0 %v1091_v14 }
  0x9e   : > { %971 = vmatmul.mubr.bf16.gmra.mxu0 %v1092_v15 }
 0x146   : > { %v960_v25 = vpop.f32.mrf.mxu0 }
 0x147   : > { %v519_v29 = vadd.f32 %v960_v25, %v1492_v26 }
 0x148   : > { %v452_v27 = vpop.f32.mrf.mxu0 }
 0x149   : > { %v517_v31 = vadd.f32 %v1492_v26, %v452_v27  ;;  %v535_v34 = vmax.f32 %v519_v29, 0.0 }
 0x14a   : > { %v961_v30 = vpop.f32.mrf.mxu0 }
 0x14b   : > { %v520_v32 = vadd.f32 %v961_v30, %v1494_v28  ;;  %v533_v38 = vmax.f32 %v517_v31, 0.0 }
 0x14c   : > { %v455_v33 = vpop.f32.mrf.mxu0 }
 0x14d   : > { %v536_v35 = vmax.f32 %v520_v32, 0.0  ;;  %v518_v36 = vadd.f32 %v1494_v28, %v455_v33 }
 0x14e   : > { %v964_v37 = vpop.f32.mrf.mxu0 }
 0x14f   : > { %v556_v39 = vmax.f32 %v535_v34, %v536_v35  ;;  %v534_v40 = vmax.f32 %v518_v36, 0.0  ;;  %v523_v43 = vadd.f32 %v964_v37, %v1492_v26 }
 0x150   : > { %v468_v41 = vpop.f32.mrf.mxu0 }
 0x151   : > { %v549_v42 = vmax.f32 %v533_v38, %v534_v40  ;;  %v557_v45 = vrot.slane %v556_v39, 4  ;;  %v521_v47 = vadd.f32 %v1492_v26, %v468_v41  ;;  %v539_v51 = vmax.f32 %v523_v43, 0.0 }
 0x152   : > { %v965_v44 = vpop.f32.mrf.mxu0 }
 0x153   : > { %v550_v46 = vrot.slane %v549_v42, 4  ;;  %v524_v48 = vadd.f32 %v965_v44, %v1494_v28  ;;  %v558_v55 = vmax.f32 %v556_v39, %v557_v45  ;;  %v537_v56 = vmax.f32 %v521_v47, 0.0 }
 0x154   : > { %v471_v49 = vpop.f32.mrf.mxu0 }
 0x155   : > { %v551_v50 = vmax.f32 %v549_v42, %v550_v46  ;;  %v540_v52 = vmax.f32 %v524_v48, 0.0  ;;  %v522_v53 = vadd.f32 %v1494_v28, %v471_v49  ;;  %v559_v1 = vrot.slane %v558_v55, 2 }
 0x156   : > { %v968_v54 = vpop.f32.mrf.mxu0 }
 0x157   : > { %v570_v57 = vmax.f32 %v539_v51, %v540_v52  ;;  %v538_v58 = vmax.f32 %v522_v53, 0.0  ;;  %v552_v60 = vrot.slane %v551_v50, 2  ;;  %v527_v63 = vadd.f32 %v968_v54, %v1492_v26 }
 0x158   : > { %v484_v59 = vpop.f32.mrf.mxu0  ;;  %v560_v13 = vmax.f32 %v558_v55, %v559_v1 }
 0x159   : > { %v571_v61 = vrot.slane %v570_v57, 4  ;;  %v563_v62 = vmax.f32 %v537_v56, %v538_v58  ;;  %v525_v4 = vadd.f32 %v1492_v26, %v484_v59  ;;  %v553_v7 = vmax.f32 %v551_v50, %v552_v60 }
 0x15a   : > { %v969_v0 = vpop.f32.mrf.mxu0  ;;  %v543_v9 = vmax.f32 %v527_v63, 0.0  ;;  %v561_v27 = vrot.slane %v560_v13, 1 }
 0x15b   : > { %v564_v2 = vrot.slane %v563_v62, 4  ;;  %v572_v3 = vmax.f32 %v570_v57, %v571_v61  ;;  %v528_v5 = vadd.f32 %v969_v0, %v1494_v28  ;;  %v541_v16 = vmax.f32 %v525_v4, 0.0 }
 0x15c   : > { %v487_v6 = vpop.f32.mrf.mxu0  ;;  %v554_v20 = vrot.slane %v553_v7, 1  ;;  %v562_v42 = vmax.f32 %v560_v13, %v561_v27 }
 0x15d   : > { %v565_v8 = vmax.f32 %v563_v62, %v564_v2  ;;  %v544_v10 = vmax.f32 %v528_v5, 0.0  ;;  %v526_v11 = vadd.f32 %v1494_v28, %v487_v6  ;;  %v573_v15 = vrot.slane %v572_v3, 2 }
 0x15e   : > { %v972_v12 = vpop.f32.mrf.mxu0  ;;  %v555_v36 = vmax.f32 %v553_v7, %v554_v20  ;;  %v606_v53 = vpack.c.bf16 %v562_v42, %v562_v42 }
 0x15f   : > { %v566_v14 = vrot.slane %v565_v8, 2  ;;  %v584_v17 = vmax.f32 %v543_v9, %v544_v10  ;;  %v542_v18 = vmax.f32 %v526_v11, 0.0  ;;  %v531_v24 = vadd.f32 %v972_v12, %v1492_v26 }
 0x160   : > { %v500_v19 = vpop.f32.mrf.mxu0  ;;  %v574_v31 = vmax.f32 %v572_v3, %v573_v15  ;;  %v605_v50 = vpack.c.bf16 %v555_v36, %v555_v36  ;;  %v645_v63 = vunpack.c.l.b16 %v606_v53 }
 0x161   : > { %v567_v21 = vmax.f32 %v565_v8, %v566_v14  ;;  %v585_v22 = vrot.slane %v584_v17, 4  ;;  %v577_v23 = vmax.f32 %v541_v16, %v542_v18  ;;  %v529_v30 = vadd.f32 %v1492_v26, %v500_v19 }
 0x162   : > { %v973_v25 = vpop.f32.mrf.mxu0  ;;  %v547_v40 = vmax.f32 %v531_v24, 0.0  ;;  %v575_v46 = vrot.slane %v574_v31, 1  ;;  %v644_v60 = vunpack.c.l.b16 %v605_v50 }
 0x163   : > { %v568_v29 = vrot.slane %v567_v21, 1  ;;  %v586_v32 = vmax.f32 %v584_v17, %v585_v22  ;;  %v578_v33 = vrot.slane %v577_v23, 4  ;;  %v532_v34 = vadd.f32 %v973_v25, %v1494_v28 }
 0x164   : > { %v503_v35 = vpop.f32.mrf.mxu0  ;;  %v545_v44 = vmax.f32 %v529_v30, 0.0  ;;  %v653_v7 = vsel %vm652_vm1, %v645_v63, %v644_v60 }
 0x165   : > { %v530_v37 = vadd.f32 %v1494_v28, %v503_v35  ;;  %v587_v38 = vrot.slane %v586_v32, 2  ;;  %v579_v39 = vmax.f32 %v577_v23, %v578_v33  ;;  %v548_v41 = vmax.f32 %v532_v34, 0.0 }
 0x166   : > { %v569_v43 = vmax.f32 %v567_v21, %v568_v29  ;;  %v576_v28 = vmax.f32 %v574_v31, %v575_v46  ;;  %v902_v29 = vld [vmem:[%s1567_s4] ss:$0 sm:$0xff] }
 0x167   : > { %v546_v45 = vmax.f32 %v530_v37, 0.0  ;;  %v588_v47 = vmax.f32 %v586_v32, %v587_v38  ;;  %v580_v26 = vrot.slane %v579_v39, 2  ;;  %v598_v48 = vmax.f32 %v547_v40, %v548_v41 }
 0x168   : > { %v607_v54 = vpack.c.bf16 %v569_v43, %v569_v43  ;;  %v608_v2 = vpack.c.bf16 %v576_v28, %v576_v28 }
 0x169   : > { %v591_v49 = vmax.f32 %v545_v44, %v546_v45  ;;  %v581_v51 = vmax.f32 %v579_v39, %v580_v26  ;;  %v599_v52 = vrot.slane %v598_v48, 4  ;;  %v589_v56 = vrot.slane %v588_v47, 1 }
 0x16a   : > { %v646_v0 = vunpack.c.l.b16 %v607_v54  ;;  %v647_v12 = vunpack.c.l.b16 %v608_v2 }
 0x16b   : > { %v592_v55 = vrot.slane %v591_v49, 4  ;;  %v582_v57 = vrot.slane %v581_v51, 1  ;;  %v600_v58 = vmax.f32 %v598_v48, %v599_v52  ;;  %v590_v3 = vmax.f32 %v588_v47, %v589_v56 }
 0x16c   : > { %v655_v9 = vsel %vm654_vm2, %v646_v0, %v653_v7 }
 0x16d   : > { %v593_v59 = vmax.f32 %v591_v49, %v592_v55  ;;  %v583_v61 = vmax.f32 %v581_v51, %v582_v57  ;;  %v601_v62 = vrot.slane %v600_v58, 2  ;;  %v610_v13 = vpack.c.bf16 %v590_v3, %v590_v3 }
 0x16e   : > { %v657_v17 = vsel %vm656_vm3, %v647_v12, %v655_v9 }
 0x16f   : > { %v594_v1 = vrot.slane %v593_v59, 2  ;;  %v609_v4 = vpack.c.bf16 %v583_v61, %v583_v61  ;;  %v602_v5 = vmax.f32 %v600_v58, %v601_v62  ;;  %v649_v20 = vunpack.c.l.b16 %v610_v13 }
 0x171   : > { %v595_v6 = vmax.f32 %v593_v59, %v594_v1  ;;  %v603_v8 = vrot.slane %v602_v5, 1  ;;  %v648_v10 = vunpack.c.l.b16 %v609_v4 }
 0x173   : > { %v596_v11 = vrot.slane %v595_v6, 1  ;;  %v604_v14 = vmax.f32 %v602_v5, %v603_v8  ;;  %v659_v19 = vsel %vm658_vm4, %v648_v10, %v657_v17 }
 0x174   : > { %v661_v23 = vsel %vm660_vm5, %v649_v20, %v659_v19 }
 0x175   : > { %v597_v15 = vmax.f32 %v595_v6, %v596_v11  ;;  %v612_v16 = vpack.c.bf16 %v604_v14, %v604_v14 }
 0x177   : > { %v611_v18 = vpack.c.bf16 %v597_v15, %v597_v15  ;;  %v651_v22 = vunpack.c.l.b16 %v612_v16 }
 0x179   : > { %v650_v21 = vunpack.c.l.b16 %v611_v18 }
 0x17b   : > { %v663_v24 = vsel %vm662_vm6, %v650_v21, %v661_v23 }
 0x17c   : > { %v665_v25 = vsel %vm664_vm7, %v651_v22, %v663_v24 }
 0x17d   : > { %v666_v27 = vpack.c.b16 %v665_v25, %v665_v25 }
 0x17f   : > { %991 = vmatmul.mubr.bf16.vlgmr.msra.gmra.mxu1 %v666_v27 }
 0x23f   : > { %v750_v30 = vpop.f32.mrf.mxu1 }
 0x240   : > { %v751_v31 = vadd.f32 %v902_v29, %v750_v30 }
 0x241   : > { %v992_v32 = vpop.f32.mrf.mxu1 }
 0x242   : > { %756 = vst [vmem:[%s287_s28] sm:$0xff] %v751_v31 }
 0x243   : > { %v753_v33 = vpop.f32.mrf.mxu1 }
 0x244   : > { %1220 = shalt.err (!%p1217_p9)
}
 0x245   : > { %s1221_s14 = scalar_lea.hbm %s1520_s12, 128  ;;  %s1225_s24 = scalar_lea.hbm %s1568_s5, 256 }
 0x246   : > { %p1222_p1 = scmp.ne.s32.totalorder %s1520_s12, %s1221_s14  ;;  %p1226_p8 = scmp.lt.s32.totalorder %s1520_s12, %s1568_s5 }
 0x247   : > { %p1227_p3 = scmp.lt.s32.totalorder %s1225_s24, %s1221_s14 }
 0x248   : > { %p1223_p4 = pnand %p1222_p1, %p1587_p12 }
 0x249   : > { %p1228_p11 = por %p1227_p3, %p1226_p8 }
 0x24a   : > { %p1224_p6 = pneg %p1223_p4 }
 0x24c   : > { %p1229_p7 = pnand %p1228_p11, %p1224_p6 }
 0x24e   : > { %1232 = shalt.err (!%p1229_p7)
}
 0x24f   : > { %1008 = dma.vmem_to_hbm [thread:$0]  (%p1587_p12), %s1522_s30, 128, %s1520_s12, %s758_s23   ;;  %v993_v34 = vpop.f32.mrf.mxu1 }
 0x250 PF: > { %s783_s17 = sand.u32 1, %s1267_s18   ;;  %p1588_p13 = scmp.ne.s32.totalorder %s1575_s25, 0 }
 0x251   : > { %p1589_p0 = scmp.ge.s32.totalorder %s1279_s21, 2  ;;  %s784_s28 = scalar_lea.sflag [#allocation4], %s783_s17 }
 0x253   : > { %p1025_p5 = pnand %p1589_p0, %p1588_p13 }
 0x255   : > { %p1026_p10 = pneg %p1025_p5 }
 0x257   : > { %1262 = dma.done.wait (%p1026_p10), %s784_s28, 128  }
 0x258   : > { %1264 = vsyncadd (%p1026_p10), %s784_s28, 4294967168  ;;  %p20_p2 = scmp.ge.s32.totalorder %s1397_s27, 4   ;;  %s1590_s18 = smov %s1271_s19 }
 0x259   : > { %s1591_s19 = smov %s1275_s20  ;;  %s1592_s20 = smov %s1418_s10 }
 0x25a   : > { %s1593_s21 = smov %s1397_s27  ;;  %22 = sbr.rel (!%p20_p2) target bundleno = 7 (0x7), region = 97 }
 0x25f   :  { %789 = vsyncpa [#allocation3], 1 }
 0x260   :  { %791 = vsyncpa [#allocation3 + $0x1], 1 }
 0x261   :  { %792 = vsyncpa [#allocation6], 1 }
 0x262   :  { %793 = vsyncpa [#allocation9], 1 }
 0x263   :  { %794 = vsyncpa [#allocation4], 1 }
 0x264   :  { %796 = vsyncpa [#allocation4 + $0x1], 1 }

</bundles_post_ra>
